<compile_context>
chip_gen: v7x
topology: tpu7x:2x2x1
jax: 0.10.0
libtpu: 0.0.40
codegen_flags: <defaults>
</compile_context>

<pallas_src>
import functools

import numpy as np
import jax
import jax.numpy as jnp
from jax.experimental import pallas as pl
from jax.experimental.pallas import tpu as pltpu

_PAD = 16  # 16-row alignment: matches bf16 sublane packing (16, 128)


def _round_up(v, m):
    return (v + m - 1) // m * m


def _leaky_relu(v, slope=0.2):
    return jnp.where(v > 0, v, slope * v)


# --------------------------------------------------------------------------
# Kernel
# --------------------------------------------------------------------------
def _make_rrdb_kernel(c_pad, g_pad, num_rdb=3, num_layers=5):
    """Build the RRDB kernel for static (padded) channel sizes.

    bf16 feature-buffer row layout (sublane axis), K = c_pad + 4*g_pad rows:
        [0, c_pad)                           : RDB input (x / previous RDB out)
        [c_pad + k*g_pad, c_pad+(k+1)*g_pad) : dense feature out_{k+1}
    Packed weight row layout: per RDB a block of K rows; layer l occupies rows
    [rdb*K + l*g_pad, ...).  Layer l only contracts the first
    c_pad + l*g_pad feature rows (all of which are written by then).
    """
    k_total = c_pad + (num_layers - 1) * g_pad

    def kernel(x_ref, w_ref, b_ref, o_ref, feat_ref, h_ref):
        # Running RDB residual kept in a small f32 scratch (no vreg spills,
        # full precision on the residual path).
        h_ref[...] = x_ref[...]
        for rdb in range(num_rdb):
            # current RDB input occupies the "x" slot of the bf16 feature buffer
            feat_ref[0:c_pad, :] = h_ref[...].astype(jnp.bfloat16)
            for layer in range(num_layers):
                roff = rdb * k_total + layer * g_pad            # 16-aligned
                rlen = g_pad if layer < num_layers - 1 else c_pad
                kin = c_pad + layer * g_pad                     # valid rows so far
                # One MXU matmul per 1x1 conv: bf16 operands straight from the
                # resident weight pack / bf16 feature scratch, f32 accumulation.
                y = jnp.dot(
                    w_ref[roff:roff + rlen, 0:kin],
                    feat_ref[0:kin, :],
                    preferred_element_type=jnp.float32,
                ) + b_ref[roff:roff + rlen, :]                  # (rlen, tile_m)
                if layer < num_layers - 1:
                    off = c_pad + layer * g_pad
                    feat_ref[off:off + g_pad, :] = _leaky_relu(y).astype(
                        jnp.bfloat16)
                else:
                    # conv5 + in-block residual (pad rows of y are exactly 0)
                    h_ref[...] = y * 0.2 + h_ref[...]
        # outer RRDB residual; lane-dense (tile_m) unmasked store
        o_ref[...] = h_ref[...] * 0.2 + x_ref[...]

    return kernel


# --------------------------------------------------------------------------
# Parameters: PyTorch-layout init + packing for the kernel
# --------------------------------------------------------------------------
def init_rrdb_params(key, channels, growths, num_rdb=3):
    """Deterministic synthetic 1x1-conv parameters in PyTorch layout.

    Returns a list of 15 (W, b) pairs, W: (c_out, c_in), b: (c_out,), f32.
    """
    params = []
    for _ in range(num_rdb):
        for layer in range(5):
            c_in = channels + growths * layer
            c_out = growths if layer < 4 else channels
            key, kw, kb = jax.random.split(key, 3)
            w = jax.random.normal(kw, (c_out, c_in), jnp.float32) / jnp.sqrt(
                jnp.float32(c_in))
            b = jax.random.normal(kb, (c_out,), jnp.float32) * 0.01
            params.append((w, b))
    return params


def pack_rrdb_params(params, channels, growths, num_rdb=3):
    """Pack the 15 conv weights/biases into two arrays for the kernel.

    w_packed: bf16 (num_rdb*K, K) with K = c_pad + 4*g_pad; the row block of
    layer l of RDB r starts at r*K + l*g_pad (16-aligned).  Pad rows/columns
    are zero.  b_packed: f32 (num_rdb*K, 1).
    """
    c_pad = _round_up(channels, _PAD)
    g_pad = _round_up(growths, _PAD)
    k_total = c_pad + 4 * g_pad
    r_total = num_rdb * k_total

    w_packed = np.zeros((r_total, k_total), np.float32)
    b_packed = np.zeros((r_total, 1), np.float32)

    idx = 0
    for rdb in range(num_rdb):
        for layer in range(5):
            w, b = params[idx]
            idx += 1
            w_np = np.asarray(w)
            c_out = w_np.shape[0]
            roff = rdb * k_total + layer * g_pad
            # x columns
            w_packed[roff:roff + c_out, 0:channels] = w_np[:, 0:channels]
            # dense-feature columns (out_1 .. out_layer)
            for k in range(layer):
                src = w_np[:, channels + k * growths:channels + (k + 1) * growths]
                dst = c_pad + k * g_pad
                w_packed[roff:roff + c_out, dst:dst + growths] = src
            b_packed[roff:roff + c_out, 0] = np.asarray(b)
    # Weights are grid-resident and fed to the MXU as bf16 -> cast once here.
    return jnp.asarray(w_packed, jnp.bfloat16), jnp.asarray(b_packed, jnp.float32)


# --------------------------------------------------------------------------
# Wrapper
# --------------------------------------------------------------------------
def _pick_tile_m(m):
    # Big lane-dense tiles, but keep >= 4 grid steps so v7x megacore (2 TCs)
    # still has >= 2 pipelined steps per core.
    for t in (4096, 2048, 1024, 512, 256, 128):
        if m >= 4 * t:
            return t
    return 128


@functools.partial(jax.jit, static_argnames=("tile_m",))
def _rrdb_forward_impl(x_nchw, w_packed, b_packed, tile_m):
    n, c, hh, ww = x_nchw.shape
    m = n * hh * ww
    r_total, k_total = w_packed.shape
    c_pad = _round_up(c, _PAD)
    g_pad = (k_total - c_pad) // 4
    m_pad = _round_up(m, tile_m)

    # NCHW -> (C, M): channels on sublanes, pixels on the fast lane axis.
    if n == 1:
        x2d = x_nchw.reshape(c, m)               # pure reshape, no transpose pass
    else:
        x2d = jnp.transpose(x_nchw, (1, 0, 2, 3)).reshape(c, m)
    x2d = jnp.pad(x2d, ((0, c_pad - c), (0, m_pad - m)))

    grid = (m_pad // tile_m,)
    kernel = _make_rrdb_kernel(c_pad, g_pad)

    # Advisory cost estimate for the XLA scheduler.
    flops = 0
    for layer in range(5):
        kin = c_pad + layer * g_pad
        rlen = g_pad if layer < 4 else c_pad
        flops += 2 * m_pad * kin * rlen
    flops *= 3
    w_bytes = w_packed.size * 2
    b_bytes = b_packed.size * 4
    bytes_accessed = 2 * c_pad * m_pad * 4 + w_bytes + b_bytes

    # Explicit scoped-VMEM budget (v5e default 16 MiB, v7x physical 64 MiB).
    est = (4 * c_pad * tile_m * 4           # in/out blocks, double-buffered
           + k_total * tile_m * 2           # bf16 packed-feature scratch
           + c_pad * tile_m * 4             # f32 residual scratch
           + 2 * (w_bytes + b_bytes))       # resident weights/biases
    vmem_limit = int(min(max(2 * est, 16 << 20), 48 << 20))

    out_pad = pl.pallas_call(
        kernel,
        out_shape=jax.ShapeDtypeStruct((c_pad, m_pad), jnp.float32),
        grid_spec=pltpu.PrefetchScalarGridSpec(
            num_scalar_prefetch=0,
            grid=grid,
            in_specs=[
                pl.BlockSpec((c_pad, tile_m), lambda i: (0, i)),
                pl.BlockSpec(w_packed.shape, lambda i: (0, 0)),   # grid-resident
                pl.BlockSpec(b_packed.shape, lambda i: (0, 0)),   # grid-resident
            ],
            out_specs=pl.BlockSpec((c_pad, tile_m), lambda i: (0, i)),
            scratch_shapes=[
                pltpu.VMEM((k_total, tile_m), jnp.bfloat16),  # packed features
                pltpu.VMEM((c_pad, tile_m), jnp.float32),     # running residual
            ],
        ),
        compiler_params=pltpu.CompilerParams(
            dimension_semantics=("parallel",),
            vmem_limit_bytes=vmem_limit),
        cost_estimate=pl.CostEstimate(
            flops=flops, transcendentals=0, bytes_accessed=bytes_accessed),
    )(x2d, w_packed, b_packed)

    # (c_pad, M_pad) -> (C, M) -> NCHW
    out2d = out_pad[:c, :m]
    if n == 1:
        return out2d.reshape(1, c, hh, ww)
    return jnp.transpose(out2d.reshape(c, n, hh, ww), (1, 0, 2, 3))


def rrdb_forward(x_nchw, w_packed, b_packed, tile_m=None):
    """ResidualResidualDenseBlock forward. x_nchw: (N, C, H, W) float32."""
    n, c, hh, ww = x_nchw.shape
    m = n * hh * ww
    if tile_m is None:
        tile_m = _pick_tile_m(m)
    return _rrdb_forward_impl(x_nchw, w_packed, b_packed, tile_m=tile_m)


# --------------------------------------------------------------------------
# Pure-JAX reference (PyTorch semantics) for verification
# --------------------------------------------------------------------------
def _rrdb_reference(x_nchw, params, mxu_dtype=jnp.float32):
    """Reference RRDB.  mxu_dtype=bfloat16 mirrors the kernel's MXU precision."""
    n, c, hh, ww = x_nchw.shape
    x2d = jnp.transpose(x_nchw, (0, 2, 3, 1)).reshape(-1, c)   # (M, C)

    def conv1x1(feats, w, b):
        cat = jnp.concatenate(feats, axis=-1)
        y = jnp.dot(cat.astype(mxu_dtype), w.T.astype(mxu_dtype),
                    preferred_element_type=jnp.float32)
        return y + b[None, :]

    idx = 0
    out = x2d
    for _ in range(3):
        h = out
        feats = [h]
        for layer in range(5):
            w, b = params[idx]
            idx += 1
            y = conv1x1(feats, w, b)
            if layer < 4:
                feats.append(jnp.where(y > 0, y, 0.2 * y))
            else:
                out = y * 0.2 + h
    out = out * 0.2 + x2d
    return jnp.transpose(out.reshape(n, hh, ww, c), (0, 3, 1, 2))


if __name__ == "__main__":
    channels, growths = 4, 8
    N, H, W = 2, 16, 16

    key = jax.random.PRNGKey(0)
    key, kx = jax.random.split(key)
    x = jax.random.normal(kx, (N, channels, H, W), jnp.float32)

    params = init_rrdb_params(key, channels, growths)
    w_packed, b_packed = pack_rrdb_params(params, channels, growths)

    out = rrdb_forward(x, w_packed, b_packed)
    out = jax.block_until_ready(out)
    assert out.shape == (N, channels, H, W)

    # Tight check against a reference that mirrors the kernel's bf16-fed MXU.
    ref_bf16 = _rrdb_reference(x, params, mxu_dtype=jnp.bfloat16)
    assert jnp.allclose(out, ref_bf16, atol=2e-3, rtol=2e-3), \
        "mismatch vs bf16-mirror reference"

    # Loose sanity check against full-f32 (PyTorch-equivalent) math.
    ref_f32 = _rrdb_reference(x, params, mxu_dtype=jnp.float32)
    assert jnp.allclose(out, ref_f32, atol=1e-1, rtol=1e-1), \
        "mismatch vs f32 reference"

    print("KERNEL_OK")
</pallas_src>

<mosaic_0001>
module attributes {stable_mosaic.version = 11 : i64} {
  func.func @kernel(%arg0: i32, %arg1: memref<16x128xf32, #tpu.memory_space<vmem>>, %arg2: memref<240x80xbf16, #tpu.memory_space<vmem>>, %arg3: memref<240x1xf32, #tpu.memory_space<vmem>>, %arg4: memref<16x128xf32, #tpu.memory_space<vmem>>, %arg5: memref<80x128xbf16, #tpu.memory_space<vmem>>, %arg6: memref<16x128xf32, #tpu.memory_space<vmem>>) attributes {dimension_semantics = [#tpu.dimension_semantics<parallel>], iteration_bounds = array<i64: 4>, scalar_prefetch = 0 : i64, scratch_operands = 2 : i64, tpu.core_type = #tpu.core_type<tc>, window_params = [{transform_indices = @transform_0, window_bounds = array<i64: 16, 128>}, {pipeline_mode = #tpu.pipeline_mode<synchronous>, transform_indices = @transform_1, window_bounds = array<i64: 240, 80>}, {pipeline_mode = #tpu.pipeline_mode<synchronous>, transform_indices = @transform_2, window_bounds = array<i64: 240, 1>}, {transform_indices = @transform_3, window_bounds = array<i64: 16, 128>}]} {
    %c0 = arith.constant 0 : index
    %c0_0 = arith.constant 0 : index
    %0 = vector.load %arg1[%c0, %c0_0] : memref<16x128xf32, #tpu.memory_space<vmem>>, vector<16x128xf32>
    %c0_1 = arith.constant 0 : index
    %c0_2 = arith.constant 0 : index
    %1 = vector.load %arg6[%c0_1, %c0_2] : memref<16x128xf32, #tpu.memory_space<vmem>>, vector<16x128xf32>
    tpu.vector_store %arg6[%c0_1, %c0_2], %0 {strides = array<i32>} : memref<16x128xf32, #tpu.memory_space<vmem>>, vector<16x128xf32>,
    %c0_3 = arith.constant 0 : index
    %c0_4 = arith.constant 0 : index
    %2 = vector.load %arg6[%c0_3, %c0_4] : memref<16x128xf32, #tpu.memory_space<vmem>>, vector<16x128xf32>
    %3 = arith.truncf %2 : vector<16x128xf32> to vector<16x128xbf16>
    %c0_5 = arith.constant 0 : index
    %c0_6 = arith.constant 0 : index
    %4 = vector.load %arg5[%c0_5, %c0_6] : memref<80x128xbf16, #tpu.memory_space<vmem>>, vector<16x128xbf16>
    tpu.vector_store %arg5[%c0_5, %c0_6], %3 {strides = array<i32>} : memref<80x128xbf16, #tpu.memory_space<vmem>>, vector<16x128xbf16>,
    %c0_7 = arith.constant 0 : index
    %c0_8 = arith.constant 0 : index
    %5 = vector.load %arg2[%c0_7, %c0_8] : memref<240x80xbf16, #tpu.memory_space<vmem>>, vector<16x16xbf16>
    %c0_9 = arith.constant 0 : index
    %c0_10 = arith.constant 0 : index
    %6 = vector.load %arg5[%c0_9, %c0_10] : memref<80x128xbf16, #tpu.memory_space<vmem>>, vector<16x128xbf16>
    %cst = arith.constant dense<0.000000e+00> : vector<16x128xf32>
    %7 = tpu.matmul %5, %6, %cst {dimension_numbers = #tpu.dot_dimension_numbers<[1], [0], [0], [1], [0, 0, 1, 1], [], []>} : vector<16x16xbf16>, vector<16x128xbf16>, vector<16x128xf32> -> vector<16x128xf32>
    %c0_11 = arith.constant 0 : index
    %c0_12 = arith.constant 0 : index
    %8 = vector.load %arg3[%c0_11, %c0_12] : memref<240x1xf32, #tpu.memory_space<vmem>>, vector<16x1xf32>
    %9 = vector.broadcast %8 : vector<16x1xf32> to vector<16x128xf32>
    %10 = arith.addf %7, %9 : vector<16x128xf32>
    %cst_13 = arith.constant 0.000000e+00 : f32
    %11 = vector.broadcast %cst_13 : f32 to vector<16x128xf32>
    %12 = arith.cmpf ogt, %10, %11 : vector<16x128xf32>
    %cst_14 = arith.constant 2.000000e-01 : f32
    %13 = vector.broadcast %cst_14 : f32 to vector<16x128xf32>
    %14 = arith.mulf %13, %10 : vector<16x128xf32>
    %15 = arith.select %12, %10, %14 : vector<16x128xi1>, vector<16x128xf32>
    %16 = arith.truncf %15 : vector<16x128xf32> to vector<16x128xbf16>
    %c16 = arith.constant 16 : index
    %c0_15 = arith.constant 0 : index
    %17 = vector.load %arg5[%c16, %c0_15] : memref<80x128xbf16, #tpu.memory_space<vmem>>, vector<16x128xbf16>
    tpu.vector_store %arg5[%c16, %c0_15], %16 {strides = array<i32>} : memref<80x128xbf16, #tpu.memory_space<vmem>>, vector<16x128xbf16>,
    %c16_16 = arith.constant 16 : index
    %c0_17 = arith.constant 0 : index
    %18 = vector.load %arg2[%c16_16, %c0_17] : memref<240x80xbf16, #tpu.memory_space<vmem>>, vector<16x32xbf16>
    %c0_18 = arith.constant 0 : index
    %c0_19 = arith.constant 0 : index
    %19 = vector.load %arg5[%c0_18, %c0_19] : memref<80x128xbf16, #tpu.memory_space<vmem>>, vector<32x128xbf16>
    %cst_20 = arith.constant dense<0.000000e+00> : vector<16x128xf32>
    %20 = tpu.matmul %18, %19, %cst_20 {dimension_numbers = #tpu.dot_dimension_numbers<[1], [0], [0], [1], [0, 0, 1, 1], [], []>} : vector<16x32xbf16>, vector<32x128xbf16>, vector<16x128xf32> -> vector<16x128xf32>
    %c16_21 = arith.constant 16 : index
    %c0_22 = arith.constant 0 : index
    %21 = vector.load %arg3[%c16_21, %c0_22] : memref<240x1xf32, #tpu.memory_space<vmem>>, vector<16x1xf32>
    %22 = vector.broadcast %21 : vector<16x1xf32> to vector<16x128xf32>
    %23 = arith.addf %20, %22 : vector<16x128xf32>
    %cst_23 = arith.constant 0.000000e+00 : f32
    %24 = vector.broadcast %cst_23 : f32 to vector<16x128xf32>
    %25 = arith.cmpf ogt, %23, %24 : vector<16x128xf32>
    %cst_24 = arith.constant 2.000000e-01 : f32
    %26 = vector.broadcast %cst_24 : f32 to vector<16x128xf32>
    %27 = arith.mulf %26, %23 : vector<16x128xf32>
    %28 = arith.select %25, %23, %27 : vector<16x128xi1>, vector<16x128xf32>
    %29 = arith.truncf %28 : vector<16x128xf32> to vector<16x128xbf16>
    %c32 = arith.constant 32 : index
    %c0_25 = arith.constant 0 : index
    %30 = vector.load %arg5[%c32, %c0_25] : memref<80x128xbf16, #tpu.memory_space<vmem>>, vector<16x128xbf16>
    tpu.vector_store %arg5[%c32, %c0_25], %29 {strides = array<i32>} : memref<80x128xbf16, #tpu.memory_space<vmem>>, vector<16x128xbf16>,
    %c32_26 = arith.constant 32 : index
    %c0_27 = arith.constant 0 : index
    %31 = vector.load %arg2[%c32_26, %c0_27] : memref<240x80xbf16, #tpu.memory_space<vmem>>, vector<16x48xbf16>
    %c0_28 = arith.constant 0 : index
    %c0_29 = arith.constant 0 : index
    %32 = vector.load %arg5[%c0_28, %c0_29] : memref<80x128xbf16, #tpu.memory_space<vmem>>, vector<48x128xbf16>
    %cst_30 = arith.constant dense<0.000000e+00> : vector<16x128xf32>
    %33 = tpu.matmul %31, %32, %cst_30 {dimension_numbers = #tpu.dot_dimension_numbers<[1], [0], [0], [1], [0, 0, 1, 1], [], []>} : vector<16x48xbf16>, vector<48x128xbf16>, vector<16x128xf32> -> vector<16x128xf32>
    %c32_31 = arith.constant 32 : index
    %c0_32 = arith.constant 0 : index
    %34 = vector.load %arg3[%c32_31, %c0_32] : memref<240x1xf32, #tpu.memory_space<vmem>>, vector<16x1xf32>
    %35 = vector.broadcast %34 : vector<16x1xf32> to vector<16x128xf32>
    %36 = arith.addf %33, %35 : vector<16x128xf32>
    %cst_33 = arith.constant 0.000000e+00 : f32
    %37 = vector.broadcast %cst_33 : f32 to vector<16x128xf32>
    %38 = arith.cmpf ogt, %36, %37 : vector<16x128xf32>
    %cst_34 = arith.constant 2.000000e-01 : f32
    %39 = vector.broadcast %cst_34 : f32 to vector<16x128xf32>
    %40 = arith.mulf %39, %36 : vector<16x128xf32>
    %41 = arith.select %38, %36, %40 : vector<16x128xi1>, vector<16x128xf32>
    %42 = arith.truncf %41 : vector<16x128xf32> to vector<16x128xbf16>
    %c48 = arith.constant 48 : index
    %c0_35 = arith.constant 0 : index
    %43 = vector.load %arg5[%c48, %c0_35] : memref<80x128xbf16, #tpu.memory_space<vmem>>, vector<16x128xbf16>
    tpu.vector_store %arg5[%c48, %c0_35], %42 {strides = array<i32>} : memref<80x128xbf16, #tpu.memory_space<vmem>>, vector<16x128xbf16>,
    %c48_36 = arith.constant 48 : index
    %c0_37 = arith.constant 0 : index
    %44 = vector.load %arg2[%c48_36, %c0_37] : memref<240x80xbf16, #tpu.memory_space<vmem>>, vector<16x64xbf16>
    %c0_38 = arith.constant 0 : index
    %c0_39 = arith.constant 0 : index
    %45 = vector.load %arg5[%c0_38, %c0_39] : memref<80x128xbf16, #tpu.memory_space<vmem>>, vector<64x128xbf16>
    %cst_40 = arith.constant dense<0.000000e+00> : vector<16x128xf32>
    %46 = tpu.matmul %44, %45, %cst_40 {dimension_numbers = #tpu.dot_dimension_numbers<[1], [0], [0], [1], [0, 0, 1, 1], [], []>} : vector<16x64xbf16>, vector<64x128xbf16>, vector<16x128xf32> -> vector<16x128xf32>
    %c48_41 = arith.constant 48 : index
    %c0_42 = arith.constant 0 : index
    %47 = vector.load %arg3[%c48_41, %c0_42] : memref<240x1xf32, #tpu.memory_space<vmem>>, vector<16x1xf32>
    %48 = vector.broadcast %47 : vector<16x1xf32> to vector<16x128xf32>
    %49 = arith.addf %46, %48 : vector<16x128xf32>
    %cst_43 = arith.constant 0.000000e+00 : f32
    %50 = vector.broadcast %cst_43 : f32 to vector<16x128xf32>
    %51 = arith.cmpf ogt, %49, %50 : vector<16x128xf32>
    %cst_44 = arith.constant 2.000000e-01 : f32
    %52 = vector.broadcast %cst_44 : f32 to vector<16x128xf32>
    %53 = arith.mulf %52, %49 : vector<16x128xf32>
    %54 = arith.select %51, %49, %53 : vector<16x128xi1>, vector<16x128xf32>
    %55 = arith.truncf %54 : vector<16x128xf32> to vector<16x128xbf16>
    %c64 = arith.constant 64 : index
    %c0_45 = arith.constant 0 : index
    %56 = vector.load %arg5[%c64, %c0_45] : memref<80x128xbf16, #tpu.memory_space<vmem>>, vector<16x128xbf16>
    tpu.vector_store %arg5[%c64, %c0_45], %55 {strides = array<i32>} : memref<80x128xbf16, #tpu.memory_space<vmem>>, vector<16x128xbf16>,
    %c64_46 = arith.constant 64 : index
    %c0_47 = arith.constant 0 : index
    %57 = vector.load %arg2[%c64_46, %c0_47] : memref<240x80xbf16, #tpu.memory_space<vmem>>, vector<16x80xbf16>
    %c0_48 = arith.constant 0 : index
    %c0_49 = arith.constant 0 : index
    %58 = vector.load %arg5[%c0_48, %c0_49] : memref<80x128xbf16, #tpu.memory_space<vmem>>, vector<80x128xbf16>
    %cst_50 = arith.constant dense<0.000000e+00> : vector<16x128xf32>
    %59 = tpu.matmul %57, %58, %cst_50 {dimension_numbers = #tpu.dot_dimension_numbers<[1], [0], [0], [1], [0, 0, 1, 1], [], []>} : vector<16x80xbf16>, vector<80x128xbf16>, vector<16x128xf32> -> vector<16x128xf32>
    %c64_51 = arith.constant 64 : index
    %c0_52 = arith.constant 0 : index
    %60 = vector.load %arg3[%c64_51, %c0_52] : memref<240x1xf32, #tpu.memory_space<vmem>>, vector<16x1xf32>
    %61 = vector.broadcast %60 : vector<16x1xf32> to vector<16x128xf32>
    %62 = arith.addf %59, %61 : vector<16x128xf32>
    %cst_53 = arith.constant 2.000000e-01 : f32
    %63 = vector.broadcast %cst_53 : f32 to vector<16x128xf32>
    %64 = arith.mulf %62, %63 : vector<16x128xf32>
    %c0_54 = arith.constant 0 : index
    %c0_55 = arith.constant 0 : index
    %65 = vector.load %arg6[%c0_54, %c0_55] : memref<16x128xf32, #tpu.memory_space<vmem>>, vector<16x128xf32>
    %66 = arith.addf %64, %65 : vector<16x128xf32>
    %c0_56 = arith.constant 0 : index
    %c0_57 = arith.constant 0 : index
    %67 = vector.load %arg6[%c0_56, %c0_57] : memref<16x128xf32, #tpu.memory_space<vmem>>, vector<16x128xf32>
    tpu.vector_store %arg6[%c0_56, %c0_57], %66 {strides = array<i32>} : memref<16x128xf32, #tpu.memory_space<vmem>>, vector<16x128xf32>,
    %c0_58 = arith.constant 0 : index
    %c0_59 = arith.constant 0 : index
    %68 = vector.load %arg6[%c0_58, %c0_59] : memref<16x128xf32, #tpu.memory_space<vmem>>, vector<16x128xf32>
    %69 = arith.truncf %68 : vector<16x128xf32> to vector<16x128xbf16>
    %c0_60 = arith.constant 0 : index
    %c0_61 = arith.constant 0 : index
    %70 = vector.load %arg5[%c0_60, %c0_61] : memref<80x128xbf16, #tpu.memory_space<vmem>>, vector<16x128xbf16>
    tpu.vector_store %arg5[%c0_60, %c0_61], %69 {strides = array<i32>} : memref<80x128xbf16, #tpu.memory_space<vmem>>, vector<16x128xbf16>,
    %c80 = arith.constant 80 : index
    %c0_62 = arith.constant 0 : index
    %71 = vector.load %arg2[%c80, %c0_62] : memref<240x80xbf16, #tpu.memory_space<vmem>>, vector<16x16xbf16>
    %c0_63 = arith.constant 0 : index
    %c0_64 = arith.constant 0 : index
    %72 = vector.load %arg5[%c0_63, %c0_64] : memref<80x128xbf16, #tpu.memory_space<vmem>>, vector<16x128xbf16>
    %cst_65 = arith.constant dense<0.000000e+00> : vector<16x128xf32>
    %73 = tpu.matmul %71, %72, %cst_65 {dimension_numbers = #tpu.dot_dimension_numbers<[1], [0], [0], [1], [0, 0, 1, 1], [], []>} : vector<16x16xbf16>, vector<16x128xbf16>, vector<16x128xf32> -> vector<16x128xf32>
    %c80_66 = arith.constant 80 : index
    %c0_67 = arith.constant 0 : index
    %74 = vector.load %arg3[%c80_66, %c0_67] : memref<240x1xf32, #tpu.memory_space<vmem>>, vector<16x1xf32>
    %75 = vector.broadcast %74 : vector<16x1xf32> to vector<16x128xf32>
    %76 = arith.addf %73, %75 : vector<16x128xf32>
    %cst_68 = arith.constant 0.000000e+00 : f32
    %77 = vector.broadcast %cst_68 : f32 to vector<16x128xf32>
    %78 = arith.cmpf ogt, %76, %77 : vector<16x128xf32>
    %cst_69 = arith.constant 2.000000e-01 : f32
    %79 = vector.broadcast %cst_69 : f32 to vector<16x128xf32>
    %80 = arith.mulf %79, %76 : vector<16x128xf32>
    %81 = arith.select %78, %76, %80 : vector<16x128xi1>, vector<16x128xf32>
    %82 = arith.truncf %81 : vector<16x128xf32> to vector<16x128xbf16>
    %c16_70 = arith.constant 16 : index
    %c0_71 = arith.constant 0 : index
    %83 = vector.load %arg5[%c16_70, %c0_71] : memref<80x128xbf16, #tpu.memory_space<vmem>>, vector<16x128xbf16>
    tpu.vector_store %arg5[%c16_70, %c0_71], %82 {strides = array<i32>} : memref<80x128xbf16, #tpu.memory_space<vmem>>, vector<16x128xbf16>,
    %c96 = arith.constant 96 : index
    %c0_72 = arith.constant 0 : index
    %84 = vector.load %arg2[%c96, %c0_72] : memref<240x80xbf16, #tpu.memory_space<vmem>>, vector<16x32xbf16>
    %c0_73 = arith.constant 0 : index
    %c0_74 = arith.constant 0 : index
    %85 = vector.load %arg5[%c0_73, %c0_74] : memref<80x128xbf16, #tpu.memory_space<vmem>>, vector<32x128xbf16>
    %cst_75 = arith.constant dense<0.000000e+00> : vector<16x128xf32>
    %86 = tpu.matmul %84, %85, %cst_75 {dimension_numbers = #tpu.dot_dimension_numbers<[1], [0], [0], [1], [0, 0, 1, 1], [], []>} : vector<16x32xbf16>, vector<32x128xbf16>, vector<16x128xf32> -> vector<16x128xf32>
    %c96_76 = arith.constant 96 : index
    %c0_77 = arith.constant 0 : index
    %87 = vector.load %arg3[%c96_76, %c0_77] : memref<240x1xf32, #tpu.memory_space<vmem>>, vector<16x1xf32>
    %88 = vector.broadcast %87 : vector<16x1xf32> to vector<16x128xf32>
    %89 = arith.addf %86, %88 : vector<16x128xf32>
    %cst_78 = arith.constant 0.000000e+00 : f32
    %90 = vector.broadcast %cst_78 : f32 to vector<16x128xf32>
    %91 = arith.cmpf ogt, %89, %90 : vector<16x128xf32>
    %cst_79 = arith.constant 2.000000e-01 : f32
    %92 = vector.broadcast %cst_79 : f32 to vector<16x128xf32>
    %93 = arith.mulf %92, %89 : vector<16x128xf32>
    %94 = arith.select %91, %89, %93 : vector<16x128xi1>, vector<16x128xf32>
    %95 = arith.truncf %94 : vector<16x128xf32> to vector<16x128xbf16>
    %c32_80 = arith.constant 32 : index
    %c0_81 = arith.constant 0 : index
    %96 = vector.load %arg5[%c32_80, %c0_81] : memref<80x128xbf16, #tpu.memory_space<vmem>>, vector<16x128xbf16>
    tpu.vector_store %arg5[%c32_80, %c0_81], %95 {strides = array<i32>} : memref<80x128xbf16, #tpu.memory_space<vmem>>, vector<16x128xbf16>,
    %c112 = arith.constant 112 : index
    %c0_82 = arith.constant 0 : index
    %97 = vector.load %arg2[%c112, %c0_82] : memref<240x80xbf16, #tpu.memory_space<vmem>>, vector<16x48xbf16>
    %c0_83 = arith.constant 0 : index
    %c0_84 = arith.constant 0 : index
    %98 = vector.load %arg5[%c0_83, %c0_84] : memref<80x128xbf16, #tpu.memory_space<vmem>>, vector<48x128xbf16>
    %cst_85 = arith.constant dense<0.000000e+00> : vector<16x128xf32>
    %99 = tpu.matmul %97, %98, %cst_85 {dimension_numbers = #tpu.dot_dimension_numbers<[1], [0], [0], [1], [0, 0, 1, 1], [], []>} : vector<16x48xbf16>, vector<48x128xbf16>, vector<16x128xf32> -> vector<16x128xf32>
    %c112_86 = arith.constant 112 : index
    %c0_87 = arith.constant 0 : index
    %100 = vector.load %arg3[%c112_86, %c0_87] : memref<240x1xf32, #tpu.memory_space<vmem>>, vector<16x1xf32>
    %101 = vector.broadcast %100 : vector<16x1xf32> to vector<16x128xf32>
    %102 = arith.addf %99, %101 : vector<16x128xf32>
    %cst_88 = arith.constant 0.000000e+00 : f32
    %103 = vector.broadcast %cst_88 : f32 to vector<16x128xf32>
    %104 = arith.cmpf ogt, %102, %103 : vector<16x128xf32>
    %cst_89 = arith.constant 2.000000e-01 : f32
    %105 = vector.broadcast %cst_89 : f32 to vector<16x128xf32>
    %106 = arith.mulf %105, %102 : vector<16x128xf32>
    %107 = arith.select %104, %102, %106 : vector<16x128xi1>, vector<16x128xf32>
    %108 = arith.truncf %107 : vector<16x128xf32> to vector<16x128xbf16>
    %c48_90 = arith.constant 48 : index
    %c0_91 = arith.constant 0 : index
    %109 = vector.load %arg5[%c48_90, %c0_91] : memref<80x128xbf16, #tpu.memory_space<vmem>>, vector<16x128xbf16>
    tpu.vector_store %arg5[%c48_90, %c0_91], %108 {strides = array<i32>} : memref<80x128xbf16, #tpu.memory_space<vmem>>, vector<16x128xbf16>,
    %c128 = arith.constant 128 : index
    %c0_92 = arith.constant 0 : index
    %110 = vector.load %arg2[%c128, %c0_92] : memref<240x80xbf16, #tpu.memory_space<vmem>>, vector<16x64xbf16>
    %c0_93 = arith.constant 0 : index
    %c0_94 = arith.constant 0 : index
    %111 = vector.load %arg5[%c0_93, %c0_94] : memref<80x128xbf16, #tpu.memory_space<vmem>>, vector<64x128xbf16>
    %cst_95 = arith.constant dense<0.000000e+00> : vector<16x128xf32>
    %112 = tpu.matmul %110, %111, %cst_95 {dimension_numbers = #tpu.dot_dimension_numbers<[1], [0], [0], [1], [0, 0, 1, 1], [], []>} : vector<16x64xbf16>, vector<64x128xbf16>, vector<16x128xf32> -> vector<16x128xf32>
    %c128_96 = arith.constant 128 : index
    %c0_97 = arith.constant 0 : index
    %113 = vector.load %arg3[%c128_96, %c0_97] : memref<240x1xf32, #tpu.memory_space<vmem>>, vector<16x1xf32>
    %114 = vector.broadcast %113 : vector<16x1xf32> to vector<16x128xf32>
    %115 = arith.addf %112, %114 : vector<16x128xf32>
    %cst_98 = arith.constant 0.000000e+00 : f32
    %116 = vector.broadcast %cst_98 : f32 to vector<16x128xf32>
    %117 = arith.cmpf ogt, %115, %116 : vector<16x128xf32>
    %cst_99 = arith.constant 2.000000e-01 : f32
    %118 = vector.broadcast %cst_99 : f32 to vector<16x128xf32>
    %119 = arith.mulf %118, %115 : vector<16x128xf32>
    %120 = arith.select %117, %115, %119 : vector<16x128xi1>, vector<16x128xf32>
    %121 = arith.truncf %120 : vector<16x128xf32> to vector<16x128xbf16>
    %c64_100 = arith.constant 64 : index
    %c0_101 = arith.constant 0 : index
    %122 = vector.load %arg5[%c64_100, %c0_101] : memref<80x128xbf16, #tpu.memory_space<vmem>>, vector<16x128xbf16>
    tpu.vector_store %arg5[%c64_100, %c0_101], %121 {strides = array<i32>} : memref<80x128xbf16, #tpu.memory_space<vmem>>, vector<16x128xbf16>,
    %c144 = arith.constant 144 : index
    %c0_102 = arith.constant 0 : index
    %123 = vector.load %arg2[%c144, %c0_102] : memref<240x80xbf16, #tpu.memory_space<vmem>>, vector<16x80xbf16>
    %c0_103 = arith.constant 0 : index
    %c0_104 = arith.constant 0 : index
    %124 = vector.load %arg5[%c0_103, %c0_104] : memref<80x128xbf16, #tpu.memory_space<vmem>>, vector<80x128xbf16>
    %cst_105 = arith.constant dense<0.000000e+00> : vector<16x128xf32>
    %125 = tpu.matmul %123, %124, %cst_105 {dimension_numbers = #tpu.dot_dimension_numbers<[1], [0], [0], [1], [0, 0, 1, 1], [], []>} : vector<16x80xbf16>, vector<80x128xbf16>, vector<16x128xf32> -> vector<16x128xf32>
    %c144_106 = arith.constant 144 : index
    %c0_107 = arith.constant 0 : index
    %126 = vector.load %arg3[%c144_106, %c0_107] : memref<240x1xf32, #tpu.memory_space<vmem>>, vector<16x1xf32>
    %127 = vector.broadcast %126 : vector<16x1xf32> to vector<16x128xf32>
    %128 = arith.addf %125, %127 : vector<16x128xf32>
    %cst_108 = arith.constant 2.000000e-01 : f32
    %129 = vector.broadcast %cst_108 : f32 to vector<16x128xf32>
    %130 = arith.mulf %128, %129 : vector<16x128xf32>
    %c0_109 = arith.constant 0 : index
    %c0_110 = arith.constant 0 : index
    %131 = vector.load %arg6[%c0_109, %c0_110] : memref<16x128xf32, #tpu.memory_space<vmem>>, vector<16x128xf32>
    %132 = arith.addf %130, %131 : vector<16x128xf32>
    %c0_111 = arith.constant 0 : index
    %c0_112 = arith.constant 0 : index
    %133 = vector.load %arg6[%c0_111, %c0_112] : memref<16x128xf32, #tpu.memory_space<vmem>>, vector<16x128xf32>
    tpu.vector_store %arg6[%c0_111, %c0_112], %132 {strides = array<i32>} : memref<16x128xf32, #tpu.memory_space<vmem>>, vector<16x128xf32>,
    %c0_113 = arith.constant 0 : index
    %c0_114 = arith.constant 0 : index
    %134 = vector.load %arg6[%c0_113, %c0_114] : memref<16x128xf32, #tpu.memory_space<vmem>>, vector<16x128xf32>
    %135 = arith.truncf %134 : vector<16x128xf32> to vector<16x128xbf16>
    %c0_115 = arith.constant 0 : index
    %c0_116 = arith.constant 0 : index
    %136 = vector.load %arg5[%c0_115, %c0_116] : memref<80x128xbf16, #tpu.memory_space<vmem>>, vector<16x128xbf16>
    tpu.vector_store %arg5[%c0_115, %c0_116], %135 {strides = array<i32>} : memref<80x128xbf16, #tpu.memory_space<vmem>>, vector<16x128xbf16>,
    %c160 = arith.constant 160 : index
    %c0_117 = arith.constant 0 : index
    %137 = vector.load %arg2[%c160, %c0_117] : memref<240x80xbf16, #tpu.memory_space<vmem>>, vector<16x16xbf16>
    %c0_118 = arith.constant 0 : index
    %c0_119 = arith.constant 0 : index
    %138 = vector.load %arg5[%c0_118, %c0_119] : memref<80x128xbf16, #tpu.memory_space<vmem>>, vector<16x128xbf16>
    %cst_120 = arith.constant dense<0.000000e+00> : vector<16x128xf32>
    %139 = tpu.matmul %137, %138, %cst_120 {dimension_numbers = #tpu.dot_dimension_numbers<[1], [0], [0], [1], [0, 0, 1, 1], [], []>} : vector<16x16xbf16>, vector<16x128xbf16>, vector<16x128xf32> -> vector<16x128xf32>
    %c160_121 = arith.constant 160 : index
    %c0_122 = arith.constant 0 : index
    %140 = vector.load %arg3[%c160_121, %c0_122] : memref<240x1xf32, #tpu.memory_space<vmem>>, vector<16x1xf32>
    %141 = vector.broadcast %140 : vector<16x1xf32> to vector<16x128xf32>
    %142 = arith.addf %139, %141 : vector<16x128xf32>
    %cst_123 = arith.constant 0.000000e+00 : f32
    %143 = vector.broadcast %cst_123 : f32 to vector<16x128xf32>
    %144 = arith.cmpf ogt, %142, %143 : vector<16x128xf32>
    %cst_124 = arith.constant 2.000000e-01 : f32
    %145 = vector.broadcast %cst_124 : f32 to vector<16x128xf32>
    %146 = arith.mulf %145, %142 : vector<16x128xf32>
    %147 = arith.select %144, %142, %146 : vector<16x128xi1>, vector<16x128xf32>
    %148 = arith.truncf %147 : vector<16x128xf32> to vector<16x128xbf16>
    %c16_125 = arith.constant 16 : index
    %c0_126 = arith.constant 0 : index
    %149 = vector.load %arg5[%c16_125, %c0_126] : memref<80x128xbf16, #tpu.memory_space<vmem>>, vector<16x128xbf16>
    tpu.vector_store %arg5[%c16_125, %c0_126], %148 {strides = array<i32>} : memref<80x128xbf16, #tpu.memory_space<vmem>>, vector<16x128xbf16>,
    %c176 = arith.constant 176 : index
    %c0_127 = arith.constant 0 : index
    %150 = vector.load %arg2[%c176, %c0_127] : memref<240x80xbf16, #tpu.memory_space<vmem>>, vector<16x32xbf16>
    %c0_128 = arith.constant 0 : index
    %c0_129 = arith.constant 0 : index
    %151 = vector.load %arg5[%c0_128, %c0_129] : memref<80x128xbf16, #tpu.memory_space<vmem>>, vector<32x128xbf16>
    %cst_130 = arith.constant dense<0.000000e+00> : vector<16x128xf32>
    %152 = tpu.matmul %150, %151, %cst_130 {dimension_numbers = #tpu.dot_dimension_numbers<[1], [0], [0], [1], [0, 0, 1, 1], [], []>} : vector<16x32xbf16>, vector<32x128xbf16>, vector<16x128xf32> -> vector<16x128xf32>
    %c176_131 = arith.constant 176 : index
    %c0_132 = arith.constant 0 : index
    %153 = vector.load %arg3[%c176_131, %c0_132] : memref<240x1xf32, #tpu.memory_space<vmem>>, vector<16x1xf32>
    %154 = vector.broadcast %153 : vector<16x1xf32> to vector<16x128xf32>
    %155 = arith.addf %152, %154 : vector<16x128xf32>
    %cst_133 = arith.constant 0.000000e+00 : f32
    %156 = vector.broadcast %cst_133 : f32 to vector<16x128xf32>
    %157 = arith.cmpf ogt, %155, %156 : vector<16x128xf32>
    %cst_134 = arith.constant 2.000000e-01 : f32
    %158 = vector.broadcast %cst_134 : f32 to vector<16x128xf32>
    %159 = arith.mulf %158, %155 : vector<16x128xf32>
    %160 = arith.select %157, %155, %159 : vector<16x128xi1>, vector<16x128xf32>
    %161 = arith.truncf %160 : vector<16x128xf32> to vector<16x128xbf16>
    %c32_135 = arith.constant 32 : index
    %c0_136 = arith.constant 0 : index
    %162 = vector.load %arg5[%c32_135, %c0_136] : memref<80x128xbf16, #tpu.memory_space<vmem>>, vector<16x128xbf16>
    tpu.vector_store %arg5[%c32_135, %c0_136], %161 {strides = array<i32>} : memref<80x128xbf16, #tpu.memory_space<vmem>>, vector<16x128xbf16>,
    %c192 = arith.constant 192 : index
    %c0_137 = arith.constant 0 : index
    %163 = vector.load %arg2[%c192, %c0_137] : memref<240x80xbf16, #tpu.memory_space<vmem>>, vector<16x48xbf16>
    %c0_138 = arith.constant 0 : index
    %c0_139 = arith.constant 0 : index
    %164 = vector.load %arg5[%c0_138, %c0_139] : memref<80x128xbf16, #tpu.memory_space<vmem>>, vector<48x128xbf16>
    %cst_140 = arith.constant dense<0.000000e+00> : vector<16x128xf32>
    %165 = tpu.matmul %163, %164, %cst_140 {dimension_numbers = #tpu.dot_dimension_numbers<[1], [0], [0], [1], [0, 0, 1, 1], [], []>} : vector<16x48xbf16>, vector<48x128xbf16>, vector<16x128xf32> -> vector<16x128xf32>
    %c192_141 = arith.constant 192 : index
    %c0_142 = arith.constant 0 : index
    %166 = vector.load %arg3[%c192_141, %c0_142] : memref<240x1xf32, #tpu.memory_space<vmem>>, vector<16x1xf32>
    %167 = vector.broadcast %166 : vector<16x1xf32> to vector<16x128xf32>
    %168 = arith.addf %165, %167 : vector<16x128xf32>
    %cst_143 = arith.constant 0.000000e+00 : f32
    %169 = vector.broadcast %cst_143 : f32 to vector<16x128xf32>
    %170 = arith.cmpf ogt, %168, %169 : vector<16x128xf32>
    %cst_144 = arith.constant 2.000000e-01 : f32
    %171 = vector.broadcast %cst_144 : f32 to vector<16x128xf32>
    %172 = arith.mulf %171, %168 : vector<16x128xf32>
    %173 = arith.select %170, %168, %172 : vector<16x128xi1>, vector<16x128xf32>
    %174 = arith.truncf %173 : vector<16x128xf32> to vector<16x128xbf16>
    %c48_145 = arith.constant 48 : index
    %c0_146 = arith.constant 0 : index
    %175 = vector.load %arg5[%c48_145, %c0_146] : memref<80x128xbf16, #tpu.memory_space<vmem>>, vector<16x128xbf16>
    tpu.vector_store %arg5[%c48_145, %c0_146], %174 {strides = array<i32>} : memref<80x128xbf16, #tpu.memory_space<vmem>>, vector<16x128xbf16>,
    %c208 = arith.constant 208 : index
    %c0_147 = arith.constant 0 : index
    %176 = vector.load %arg2[%c208, %c0_147] : memref<240x80xbf16, #tpu.memory_space<vmem>>, vector<16x64xbf16>
    %c0_148 = arith.constant 0 : index
    %c0_149 = arith.constant 0 : index
    %177 = vector.load %arg5[%c0_148, %c0_149] : memref<80x128xbf16, #tpu.memory_space<vmem>>, vector<64x128xbf16>
    %cst_150 = arith.constant dense<0.000000e+00> : vector<16x128xf32>
    %178 = tpu.matmul %176, %177, %cst_150 {dimension_numbers = #tpu.dot_dimension_numbers<[1], [0], [0], [1], [0, 0, 1, 1], [], []>} : vector<16x64xbf16>, vector<64x128xbf16>, vector<16x128xf32> -> vector<16x128xf32>
    %c208_151 = arith.constant 208 : index
    %c0_152 = arith.constant 0 : index
    %179 = vector.load %arg3[%c208_151, %c0_152] : memref<240x1xf32, #tpu.memory_space<vmem>>, vector<16x1xf32>
    %180 = vector.broadcast %179 : vector<16x1xf32> to vector<16x128xf32>
    %181 = arith.addf %178, %180 : vector<16x128xf32>
    %cst_153 = arith.constant 0.000000e+00 : f32
    %182 = vector.broadcast %cst_153 : f32 to vector<16x128xf32>
    %183 = arith.cmpf ogt, %181, %182 : vector<16x128xf32>
    %cst_154 = arith.constant 2.000000e-01 : f32
    %184 = vector.broadcast %cst_154 : f32 to vector<16x128xf32>
    %185 = arith.mulf %184, %181 : vector<16x128xf32>
    %186 = arith.select %183, %181, %185 : vector<16x128xi1>, vector<16x128xf32>
    %187 = arith.truncf %186 : vector<16x128xf32> to vector<16x128xbf16>
    %c64_155 = arith.constant 64 : index
    %c0_156 = arith.constant 0 : index
    %188 = vector.load %arg5[%c64_155, %c0_156] : memref<80x128xbf16, #tpu.memory_space<vmem>>, vector<16x128xbf16>
    tpu.vector_store %arg5[%c64_155, %c0_156], %187 {strides = array<i32>} : memref<80x128xbf16, #tpu.memory_space<vmem>>, vector<16x128xbf16>,
    %c224 = arith.constant 224 : index
    %c0_157 = arith.constant 0 : index
    %189 = vector.load %arg2[%c224, %c0_157] : memref<240x80xbf16, #tpu.memory_space<vmem>>, vector<16x80xbf16>
    %c0_158 = arith.constant 0 : index
    %c0_159 = arith.constant 0 : index
    %190 = vector.load %arg5[%c0_158, %c0_159] : memref<80x128xbf16, #tpu.memory_space<vmem>>, vector<80x128xbf16>
    %cst_160 = arith.constant dense<0.000000e+00> : vector<16x128xf32>
    %191 = tpu.matmul %189, %190, %cst_160 {dimension_numbers = #tpu.dot_dimension_numbers<[1], [0], [0], [1], [0, 0, 1, 1], [], []>} : vector<16x80xbf16>, vector<80x128xbf16>, vector<16x128xf32> -> vector<16x128xf32>
    %c224_161 = arith.constant 224 : index
    %c0_162 = arith.constant 0 : index
    %192 = vector.load %arg3[%c224_161, %c0_162] : memref<240x1xf32, #tpu.memory_space<vmem>>, vector<16x1xf32>
    %193 = vector.broadcast %192 : vector<16x1xf32> to vector<16x128xf32>
    %194 = arith.addf %191, %193 : vector<16x128xf32>
    %cst_163 = arith.constant 2.000000e-01 : f32
    %195 = vector.broadcast %cst_163 : f32 to vector<16x128xf32>
    %196 = arith.mulf %194, %195 : vector<16x128xf32>
    %c0_164 = arith.constant 0 : index
    %c0_165 = arith.constant 0 : index
    %197 = vector.load %arg6[%c0_164, %c0_165] : memref<16x128xf32, #tpu.memory_space<vmem>>, vector<16x128xf32>
    %198 = arith.addf %196, %197 : vector<16x128xf32>
    %c0_166 = arith.constant 0 : index
    %c0_167 = arith.constant 0 : index
    %199 = vector.load %arg6[%c0_166, %c0_167] : memref<16x128xf32, #tpu.memory_space<vmem>>, vector<16x128xf32>
    tpu.vector_store %arg6[%c0_166, %c0_167], %198 {strides = array<i32>} : memref<16x128xf32, #tpu.memory_space<vmem>>, vector<16x128xf32>,
    %c0_168 = arith.constant 0 : index
    %c0_169 = arith.constant 0 : index
    %200 = vector.load %arg6[%c0_168, %c0_169] : memref<16x128xf32, #tpu.memory_space<vmem>>, vector<16x128xf32>
    %cst_170 = arith.constant 2.000000e-01 : f32
    %201 = vector.broadcast %cst_170 : f32 to vector<16x128xf32>
    %202 = arith.mulf %200, %201 : vector<16x128xf32>
    %c0_171 = arith.constant 0 : index
    %c0_172 = arith.constant 0 : index
    %203 = vector.load %arg1[%c0_171, %c0_172] : memref<16x128xf32, #tpu.memory_space<vmem>>, vector<16x128xf32>
    %204 = arith.addf %202, %203 : vector<16x128xf32>
    %c0_173 = arith.constant 0 : index
    %c0_174 = arith.constant 0 : index
    %205 = vector.load %arg4[%c0_173, %c0_174] : memref<16x128xf32, #tpu.memory_space<vmem>>, vector<16x128xf32>
    tpu.vector_store %arg4[%c0_173, %c0_174], %204 {strides = array<i32>} : memref<16x128xf32, #tpu.memory_space<vmem>>, vector<16x128xf32>,
    return
  }
  func.func @transform_0(%arg0: i32) -> (i32, i32) {
    %c0_i32 = arith.constant 0 : i32
    %c0_i32_0 = arith.constant 0 : i32
    return %c0_i32, %arg0 : i32, i32
  }
  func.func @transform_1(%arg0: i32) -> (i32, i32) {
    %c0_i32 = arith.constant 0 : i32
    %c0_i32_0 = arith.constant 0 : i32
    %c0_i32_1 = arith.constant 0 : i32
    return %c0_i32, %c0_i32_0 : i32, i32
  }
  func.func @transform_2(%arg0: i32) -> (i32, i32) {
    %c0_i32 = arith.constant 0 : i32
    %c0_i32_0 = arith.constant 0 : i32
    %c0_i32_1 = arith.constant 0 : i32
    return %c0_i32, %c0_i32_0 : i32, i32
  }
  func.func @transform_3(%arg0: i32) -> (i32, i32) {
    %c0_i32 = arith.constant 0 : i32
    %c0_i32_0 = arith.constant 0 : i32
    return %c0_i32, %arg0 : i32, i32
  }
}

</mosaic_0001>

<bundles_post_ra>
// kernel: _rrdb_forward_impl.1
= control target key start
LH: loop header
LB: loop body
LE: loop exit
PB: predicated region body
PF: predicated region fallthrough
CT: control target
= control target key end

     0   :  { %s1790_s12 = smov 0   ;;  %s1792_s13 = smov 0   ;;  %s2112_s0 = inlined_call_operand.vmem [shape: f32[16,512], index: 0, kind: input, shape index: {}]   ;;  %s2113_s1 = inlined_call_operand.vmem [shape: bf16[240,80], index: 1, kind: input, shape index: {}]   ;;  %s2114_s2 = inlined_call_operand.vmem [shape: f32[240,1], index: 2, kind: input, shape index: {}]   ;;  %s2115_s3 = inlined_call_operand.vmem [shape: f32[16,512], index: 3, kind: output, shape index: {}]  }
   0x1   :  { %s1794_s14 = smov 0  }
   0x2 LB: > { %s1446_s15 = sadd.s32 4294967295, %s1765_s14   ;;  %s1807_s16 = sadd.s32 1, %s1765_s14   ;;  %s1765_s14 = sphi %s1794_s14, %s2119_s14   ;;  %s1761_s13 = sphi %s1792_s13, %s2118_s13   ;;  %s1757_s12 = sphi %s1790_s12, %s2117_s12  }
   0x3   : > { %s17_s17 = ssub.s32 %s1765_s14, %s1807_s16  ;;  %s20_s18 = sadd.s32 1, %s1761_s13 }
   0x4   : > { %p18_p0 = scmp.eq.s32.totalorder %s17_s17, 0  ;;  %p27_p1 = scmp.ne.s32.totalorder %s1761_s13, %s1757_s12 }
   0x5   : > { %p28_p2 = scmp.eq.s32.totalorder %s1765_s14, 0  ;;  %p99_p3 = scmp.eq.s32.totalorder %s1446_s15, 3 }
   0x6   : > { %s1818_s19 = scalar_select %p18_p0, %s1761_s13, %s20_s18  }
   0x7   : > { %p29_p4 = por %p28_p2, %p27_p1  ;;  %p1820_p5 = por %p99_p3, %p27_p1 }
   0x8   : > { %p1449_p6 = scmp.ge.s32.totalorder %s1765_s14, 4 }
   0xa   : > { %127 = sbr.rel (%p1449_p6) target bundleno = 24 (0x18), region = 24 }
  0x11   : > { %130 = sbr.rel (!%p29_p4) target bundleno = 24 (0x18), region = 28  ;;  %s132_s21 = sand.u32 (%p29_p4), 1, %s1761_s13  }
  0x12   : > { %s1451_s22 = sshll.u32 (%p29_p4), %s1765_s14, 3  ;;  %s1450_s23 = sshll.u32 (%p29_p4), %s132_s21, 4 }
  0x13   : > { %s136_s26 = scalar_lea.vmem (%p29_p4), %s2112_s0, %s1451_s22  ;;  %s134_s27 = scalar_lea.vmem (%p29_p4), [#allocation4], %s1450_s23 }
  0x14   : > { %v166_v0 = vld [vmem:[%s136_s26] sm:$0xff] (%p29_p4) }
  0x15   : > { %v168_v1 = vld [vmem:[%s136_s26 + $0x20] sm:$0xff] (%p29_p4)  ;;  %167 = vst [vmem:[%s134_s27] sm:$0xff] (%p29_p4), %v166_v0 }
  0x16   : > { %169 = vst [vmem:[%s134_s27 + $0x8] sm:$0xff] (%p29_p4), %v168_v1 }
  0x18 PF: > { %p1452_p7 = scmp.ge.s32.totalorder %s1765_s14, 1  ;;  %p174_p8 = scmp.lt.s32.totalorder %s1765_s14, 5 }
  0x1a   : > { %p175_p9 = pnand %p1452_p7, %p174_p8 }
  0x1b   : > { %s181_s28 = sand.u32 (!%p175_p9), 1, %s1757_s12   ;;  %v1767_v2 = vmov (!%p175_p9), 0.0   ;;  %vm1768_vm0 = vmmov (!%p175_p9), 0   ;;  %v215_v3 = vld [vmem:[%s2114_s2] sm:$0xff] (!%p175_p9)  ;;  %v1769_v4 = vmov (!%p175_p9), 0   ;;  %v216_v8 = vld [vmem:[%s2114_s2 + $0x8] sm:$0xff] (!%p175_p9) }
  0x1c   : > { %178 = sbr.rel (%p175_p9) target bundleno = 3407 (0xd4f), region = 66  ;;  %1549 = vmatprep.subr.bf16.mxu1 (!%p175_p9), %v1767_v2  ;;  %s1834_s29 = sshll.u32 (!%p175_p9), %s181_s28, 4  ;;  %1551 = vmatprep.mubr.msk.bf16.mxu1 (!%p175_p9), %vm1768_vm0, %v1767_v2  ;;  %v1728_v9 = vld [vmem:[%s2113_s1] sm:$0xff] (!%p175_p9)   ;;  %vm232_vm1 = vcmask (!%p175_p9), 130048   ;;  %v440_v11 = vld [vmem:[%s2114_s2 + $0x30] sm:$0xff] (!%p175_p9)  ;;  %v290_v24 = vld [vmem:[%s2114_s2 + $0x18] sm:$0xff] (!%p175_p9) }
  0x1d   : > { %1726 = vset.pattern.permute.xlu0 (!%p175_p9), %v1769_v4  ;;  %1563 = vmatprep.subr.bf16.mxu0 (!%p175_p9), %v1767_v2  ;;  %s183_s5 = scalar_lea.vmem (!%p175_p9), [#allocation4], %s1834_s29  ;;  %v364_v10 = vld [vmem:[%s2114_s2 + $0x20] sm:$0xff] (!%p175_p9)  ;;  %v594_v13 = vld [vmem:[%s2114_s2 + $0x50] sm:$0xff] (!%p175_p9)  ;;  %v365_v25 = vld [vmem:[%s2114_s2 + $0x28] sm:$0xff] (!%p175_p9)  ;;  %vm306_vm4 = vcmask (!%p175_p9), 261120   ;;  %vm381_vm7 = vcmask (!%p175_p9), 392192  }
  0x1e   : > { %v1843_v5 = vld [vmem:[%s183_s5] sm:$0xff] (!%p175_p9)  ;;  %v1845_v6 = vld [vmem:[%s183_s5 + $0x8] sm:$0xff] (!%p175_p9)  ;;  %219 = vperm.xlu0 (!%p175_p9), %1726, %v215_v3   ;;  %1727 = vset.pattern.permute.xlu1 (!%p175_p9), %v1769_v4  ;;  %vm457_vm10 = vcmask (!%p175_p9), 523264   ;;  %vm534_vm13 = vcmask (!%p175_p9), 654336   ;;  %s202_s18 = scalar_lea.vmem (!%p175_p9), [#allocation5], %s1834_s29 }
  0x1f   : > { %v1849_v7 = vpack.c.bf16 (!%p175_p9), %v1845_v6, %v1843_v5  ;;  %1569 = vmatprep.mubr.msk.bf16.mxu0 (!%p175_p9), %vm1768_vm0, %v1767_v2  ;;  %v517_v12 = vld [vmem:[%s2114_s2 + $0x40] sm:$0xff] (!%p175_p9)  ;;  %v741_v15 = vld [vmem:[%s2114_s2 + $0x70] sm:$0xff] (!%p175_p9)  ;;  %v441_v26 = vld [vmem:[%s2114_s2 + $0x38] sm:$0xff] (!%p175_p9) }
  0x20   : > { %v667_v14 = vld [vmem:[%s2114_s2 + $0x60] sm:$0xff] (!%p175_p9)  ;;  %v892_v17 = vld [vmem:[%s2114_s2 + $0x90] sm:$0xff] (!%p175_p9)  ;;  %v518_v27 = vld [vmem:[%s2114_s2 + $0x48] sm:$0xff] (!%p175_p9) }
  0x21   : > { %1550 = vmatpush3.bf16.msra.mxu1 (!%p175_p9), %v1849_v7  ;;  %1564 = vmatpush3.bf16.msra.mxu0 (!%p175_p9), %v1849_v7  ;;  %v816_v16 = vld [vmem:[%s2114_s2 + $0x80] sm:$0xff] (!%p175_p9)  ;;  %v1041_v19 = vld [vmem:[%s2114_s2 + $0xb0] sm:$0xff] (!%p175_p9)  ;;  %v595_v28 = vld [vmem:[%s2114_s2 + $0x58] sm:$0xff] (!%p175_p9) }
  0x22   : > { %224 = vperm.xlu0 (!%p175_p9), %1726, %v216_v8   ;;  %1555 = vmatprep.subr.bf16.mxu1 (!%p175_p9), %v1767_v2  ;;  %v968_v18 = vld [vmem:[%s2114_s2 + $0xa0] sm:$0xff] (!%p175_p9)  ;;  %v1190_v21 = vld [vmem:[%s2114_s2 + $0xd0] sm:$0xff] (!%p175_p9)  ;;  %v668_v29 = vld [vmem:[%s2114_s2 + $0x68] sm:$0xff] (!%p175_p9) }
  0x23   : > { %1565 = vmatprep.subr.bf16.mxu0 %v1767_v2  ;;  %v1115_v20 = vld [vmem:[%s2114_s2 + $0xc0] sm:$0xff]  ;;  %v289_v23 = vld [vmem:[%s2114_s2 + $0x10] sm:$0xff]  ;;  %v742_v30 = vld [vmem:[%s2114_s2 + $0x78] sm:$0xff]  ;;  %s1486_s21 = sshll.u32 (%p1820_p5), %s1446_s15, 3 }
  0x24   : > { %1552 = vmatmul.mubr.msk.bf16.vlgmr.msra.gmra.mrb[0].mxu1 %vm232_vm1, %v1728_v9  ;;  %v1266_v22 = vld [vmem:[%s2114_s2 + $0xe0] sm:$0xff]  ;;  %293 = vperm.xlu1 %1727, %v289_v23   ;;  %v817_v31 = vld [vmem:[%s2114_s2 + $0x88] sm:$0xff]  ;;  %v893_v32 = vld [vmem:[%s2114_s2 + $0x98] sm:$0xff]  ;;  %s1353_s24 = scalar_lea.vmem (%p1820_p5), %s2115_s3, %s1486_s21 }
  0x25   : > { %1556 = vmatpush3.bf16.msra.mxu1 %v1849_v7  ;;  %1559 = vmatprep.mubr.msk.bf16.mxu1 %vm1768_vm0, %v1767_v2  ;;  %v969_v33 = vld [vmem:[%s2114_s2 + $0xa8] sm:$0xff]  ;;  %v1042_v34 = vld [vmem:[%s2114_s2 + $0xb8] sm:$0xff]  ;;  %v1730_v1 = vld [vmem:[%s2113_s1 + $0x10] sm:$0xff]  }
  0x26   : > { %368 = vperm.xlu0 %1726, %v364_v10   ;;  %1557 = vmatprep.subr.bf16.mxu1 %v1767_v2  ;;  %v1116_v35 = vld [vmem:[%s2114_s2 + $0xc8] sm:$0xff]  ;;  %v1191_v36 = vld [vmem:[%s2114_s2 + $0xd8] sm:$0xff] }
  0x27   : > { %v1267_v37 = vld [vmem:[%s2114_s2 + $0xe8] sm:$0xff] }
  0x28   : > { %298 = vperm.xlu1 %1727, %v290_v24   ;;  %v1729_v51 = vld [vmem:[%s2113_s1 + $0x8] sm:$0xff]  }
  0x2a   : > { %444 = vperm.xlu0 %1726, %v440_v11  }
  0x2c   : > { %373 = vperm.xlu1 %1727, %v365_v25  }
  0x2e   : > { %521 = vperm.xlu0 %1726, %v517_v12  }
  0x30   : > { %449 = vperm.xlu1 %1727, %v441_v26  }
  0x32   : > { %598 = vperm.xlu0 %1726, %v594_v13  }
  0x34   : > { %526 = vperm.xlu1 %1727, %v518_v27  }
  0x36   : > { %671 = vperm.xlu0 %1726, %v667_v14  }
  0x38   : > { %603 = vperm.xlu1 %1727, %v595_v28  }
  0x3a   : > { %745 = vperm.xlu0 %1726, %v741_v15  }
  0x3c   : > { %676 = vperm.xlu1 %1727, %v668_v29  }
  0x3e   : > { %820 = vperm.xlu0 %1726, %v816_v16  }
  0x40   : > { %750 = vperm.xlu1 %1727, %v742_v30  }
  0x42   : > { %896 = vperm.xlu0 %1726, %v892_v17  }
  0x44   : > { %825 = vperm.xlu1 %1727, %v817_v31  }
  0x46   : > { %972 = vperm.xlu0 %1726, %v968_v18   ;;  %v1731_v18 = vld [vmem:[%s2113_s1 + $0x18] sm:$0xff]  }
  0x48   : > { %901 = vperm.xlu1 %1727, %v893_v32   ;;  %v1732_v32 = vld [vmem:[%s2113_s1 + $0x20] sm:$0xff]  }
  0x4a   : > { %1045 = vperm.xlu0 %1726, %v1041_v19  }
  0x4c   : > { %977 = vperm.xlu1 %1727, %v969_v33  }
  0x4e   : > { %1119 = vperm.xlu0 %1726, %v1115_v20  }
  0x50   : > { %1050 = vperm.xlu1 %1727, %v1042_v34  }
  0x52   : > { %1194 = vperm.xlu0 %1726, %v1190_v21  }
  0x54   : > { %1124 = vperm.xlu1 %1727, %v1116_v35  }
  0x56   : > { %1270 = vperm.xlu0 %1726, %v1266_v22  }
  0x58   : > { %1199 = vperm.xlu1 %1727, %v1191_v36  }
  0x5c   : > { %1275 = vperm.xlu1 %1727, %v1267_v37  }
  0x9d   : > { %v220_v38 = vpop.permute.xlu0 %219 }
  0xa1   : > { %v225_v42 = vpop.permute.xlu0 %224 }
  0xa3   : > { %v294_v52 = vpop.permute.xlu1 %293 }
  0xa5   : > { %v369_v3 = vpop.permute.xlu0 %368 }
  0xa7   : > { %v299_v56 = vpop.permute.xlu1 %298 }
  0xa9   : > { %v445_v19 = vpop.permute.xlu0 %444 }
  0xab   : > { %v374_v10 = vpop.permute.xlu1 %373 }
  0xad   : > { %v522_v33 = vpop.permute.xlu0 %521 }
  0xaf   : > { %v450_v23 = vpop.permute.xlu1 %449 }
  0xb3   : > { %v527_v37 = vpop.permute.xlu1 %526 }
  0xf7   : > { %v270_v39 = vpop.f32.mrb[0].mxu1 }
  0xf8   : > { %v271_v40 = vadd.f32 %v270_v39, %v220_v38  ;;  %v1553_v41 = vpop.f32.mrb[1].mxu1 }
  0xf9   : > { %v273_v43 = vpop.f32.mrb[2].mxu1 }
  0xfa   : > { %v279_v44 = vmul.f32 0.2, %v271_v40  ;;  %v274_v45 = vadd.f32 %v273_v43, %v225_v42  ;;  %v1554_v46 = vpop.f32.mrb[3].mxu1  ;;  %vm277_vm2 = vcmp.gt.f32.partialorder %v271_v40, 0.0 }
  0xfb   : > { %v1733_v46 = vld [vmem:[%s2113_s1 + $0x28] sm:$0xff]  }
  0xfc   : > { %vm278_vm3 = vcmp.gt.f32.partialorder %v274_v45, 0.0  ;;  %v280_v47 = vmul.f32 0.2, %v274_v45  ;;  %v281_v48 = vsel %vm277_vm2, %v271_v40, %v279_v44 }
  0xfe   : > { %v282_v49 = vsel %vm278_vm3, %v274_v45, %v280_v47  ;;  %v599_v47 = vpop.permute.xlu0 %598 }
  0xff   : > { %v283_v50 = vpack.c.bf16 %v282_v49, %v281_v48 }
 0x101   : > { %1558 = vmatpush3.bf16.msra.mxu1 %v283_v50  ;;  %1566 = vmatpush3.bf16.msra.mxu0 %v283_v50 }
 0x102   : > { %1573 = vmatprep.subr.bf16.mxu1 %v1767_v2  ;;  %1567 = vmatprep.subr.bf16.mxu0 %v1767_v2 }
 0x104   : > { %1560 = vmatmul.mubr.msk.bf16.vlgmr.msra.gmra.mrb[4].mxu1 %vm306_vm4, %v1729_v51  ;;  %v604_v51 = vpop.permute.xlu1 %603 }
 0x105   : > { %1574 = vmatpush3.bf16.msra.mxu1 %v1849_v7  ;;  %1581 = vmatprep.mubr.msk.bf16.mxu1 %vm1768_vm0, %v1767_v2 }
 0x106   : > { %1575 = vmatprep.subr.bf16.mxu1 %v1767_v2 }
 0x109   : > { %1576 = vmatpush3.bf16.msra.mxu1 %v283_v50 }
 0x10a   : > { %1577 = vmatprep.subr.bf16.mxu1 %v1767_v2 }
 0x1d7   : > { %v344_v53 = vpop.f32.mrb[4].mxu1 }
 0x1d8   : > { %v345_v54 = vadd.f32 %v344_v53, %v294_v52  ;;  %v1561_v55 = vpop.f32.mrb[5].mxu1 }
 0x1d9   : > { %v347_v57 = vpop.f32.mrb[6].mxu1 }
 0x1da   : > { %v353_v58 = vmul.f32 0.2, %v345_v54  ;;  %v348_v59 = vadd.f32 %v347_v57, %v299_v56  ;;  %v1562_v60 = vpop.f32.mrb[7].mxu1  ;;  %vm351_vm5 = vcmp.gt.f32.partialorder %v345_v54, 0.0 }
 0x1db   : > { %v1734_v60 = vld [vmem:[%s2113_s1 + $0x30] sm:$0xff]  }
 0x1dc   : > { %vm352_vm6 = vcmp.gt.f32.partialorder %v348_v59, 0.0  ;;  %v354_v61 = vmul.f32 0.2, %v348_v59  ;;  %v355_v62 = vsel %vm351_vm5, %v345_v54, %v353_v58 }
 0x1de   : > { %v356_v63 = vsel %vm352_vm6, %v348_v59, %v354_v61  ;;  %v672_v61 = vpop.permute.xlu0 %671 }
 0x1df   : > { %v357_v0 = vpack.c.bf16 %v356_v63, %v355_v62 }
 0x1e1   : > { %1568 = vmatpush3.bf16.msra.mxu0 %v357_v0  ;;  %1578 = vmatpush3.bf16.msra.mxu1 %v357_v0 }
 0x1e2   : > { %1585 = vmatprep.subr.bf16.mxu0 %v1767_v2  ;;  %1579 = vmatprep.subr.bf16.mxu1 %v1767_v2 }
 0x1e4   : > { %1570 = vmatmul.mubr.msk.bf16.vlgmr.msra.gmra.mrb[0].mxu0 %vm381_vm7, %v1730_v1  ;;  %v677_v1 = vpop.permute.xlu1 %676 }
 0x1e5   : > { %1586 = vmatpush3.bf16.msra.mxu0 %v1849_v7  ;;  %1595 = vmatprep.mubr.msk.bf16.mxu0 %vm1768_vm0, %v1767_v2 }
 0x1e6   : > { %1587 = vmatprep.subr.bf16.mxu0 %v1767_v2 }
 0x1e9   : > { %1588 = vmatpush3.bf16.msra.mxu0 %v283_v50 }
 0x1ea   : > { %1589 = vmatprep.subr.bf16.mxu0 %v1767_v2 }
 0x1ed   : > { %1590 = vmatpush3.bf16.msra.mxu0 %v357_v0 }
 0x1ee   : > { %1591 = vmatprep.subr.bf16.mxu0 %v1767_v2 }
 0x2b7   : > { %v419_v4 = vpop.f32.mrb[0].mxu0 }
 0x2b8   : > { %v420_v8 = vadd.f32 %v419_v4, %v369_v3  ;;  %v1571_v9 = vpop.f32.mrb[1].mxu0 }
 0x2b9   : > { %v422_v11 = vpop.f32.mrb[2].mxu0 }
 0x2ba   : > { %v428_v12 = vmul.f32 0.2, %v420_v8  ;;  %v423_v13 = vadd.f32 %v422_v11, %v374_v10  ;;  %v1572_v7 = vpop.f32.mrb[3].mxu0  ;;  %vm426_vm8 = vcmp.gt.f32.partialorder %v420_v8, 0.0 }
 0x2bb   : > { %v1735_v7 = vld [vmem:[%s2113_s1 + $0x38] sm:$0xff]  }
 0x2bc   : > { %vm427_vm9 = vcmp.gt.f32.partialorder %v423_v13, 0.0  ;;  %v429_v14 = vmul.f32 0.2, %v423_v13  ;;  %v430_v15 = vsel %vm426_vm8, %v420_v8, %v428_v12 }
 0x2be   : > { %v431_v16 = vsel %vm427_vm9, %v423_v13, %v429_v14  ;;  %v746_v14 = vpop.permute.xlu0 %745 }
 0x2bf   : > { %v432_v17 = vpack.c.bf16 %v431_v16, %v430_v15 }
 0x2c1   : > { %1580 = vmatpush3.bf16.msra.mxu1 %v432_v17  ;;  %1592 = vmatpush3.bf16.msra.mxu0 %v432_v17 }
 0x2c2   : > { %1593 = vmatprep.subr.bf16.mxu0 %v1767_v2  ;;  %1599 = vmatprep.subr.bf16.mxu1 %v1767_v2 }
 0x2c4   : > { %1582 = vmatmul.mubr.msk.bf16.vlgmr.msra.gmra.mrb[8].mxu1 %vm457_vm10, %v1731_v18  ;;  %v751_v18 = vpop.permute.xlu1 %750 }
 0x2c5   : > { %1601 = vmatprep.mubr.msk.bf16.mxu1 %vm1768_vm0, %v1767_v2 }
 0x397   : > { %v495_v20 = vpop.f32.mrb[8].mxu1 }
 0x398   : > { %v496_v21 = vadd.f32 %v495_v20, %v445_v19  ;;  %v1583_v22 = vpop.f32.mrb[9].mxu1 }
 0x399   : > { %v498_v24 = vpop.f32.mrb[10].mxu1 }
 0x39a   : > { %v504_v25 = vmul.f32 0.2, %v496_v21  ;;  %v499_v26 = vadd.f32 %v498_v24, %v450_v23  ;;  %v1584_v27 = vpop.f32.mrb[11].mxu1  ;;  %vm502_vm11 = vcmp.gt.f32.partialorder %v496_v21, 0.0 }
 0x39b   : > { %v1736_v27 = vld [vmem:[%s2113_s1 + $0x40] sm:$0xff]  }
 0x39c   : > { %vm503_vm12 = vcmp.gt.f32.partialorder %v499_v26, 0.0  ;;  %v505_v28 = vmul.f32 0.2, %v499_v26  ;;  %v506_v29 = vsel %vm502_vm11, %v496_v21, %v504_v25 }
 0x39e   : > { %v507_v30 = vsel %vm503_vm12, %v499_v26, %v505_v28  ;;  %v821_v28 = vpop.permute.xlu0 %820 }
 0x39f   : > { %v508_v31 = vpack.c.bf16 %v507_v30, %v506_v29 }
 0x3a1   : > { %1594 = vmatpush3.bf16.msra.mxu0 %v508_v31 }
 0x3a2   : > { %1613 = vmatprep.subr.bf16.mxu0 %v1767_v2 }
 0x3a4   : > { %1596 = vmatmul.mubr.msk.bf16.vlgmr.msra.gmra.mrb[4].mxu0 %vm534_vm13, %v1732_v32  ;;  %v826_v32 = vpop.permute.xlu1 %825 }
 0x3a5   : > { %1619 = vmatprep.mubr.msk.bf16.mxu0 %vm1768_vm0, %v1767_v2 }
 0x477   : > { %v572_v34 = vpop.f32.mrb[4].mxu0 }
 0x478   : > { %v573_v35 = vadd.f32 %v572_v34, %v522_v33  ;;  %v1597_v36 = vpop.f32.mrb[5].mxu0 }
 0x479   : > { %v575_v38 = vpop.f32.mrb[6].mxu0 }
 0x47a   : > { %v579_v39 = vmul.f32 0.2, %v573_v35  ;;  %v576_v40 = vadd.f32 %v575_v38, %v527_v37  ;;  %v1598_v41 = vpop.f32.mrb[7].mxu0 }
 0x47b   : > { %v1737_v41 = vld [vmem:[%s2113_s1 + $0x48] sm:$0xff]  }
 0x47c   : > { %v580_v42 = vmul.f32 0.2, %v576_v40  ;;  %v1991_v43 = vadd.f32 %v579_v39, %v1843_v5 }
 0x47e   : > { %v1994_v44 = vadd.f32 %v580_v42, %v1845_v6  ;;  %v897_v42 = vpop.permute.xlu0 %896 }
 0x480   : > { %v589_v45 = vpack.c.bf16 %v1994_v44, %v1991_v43 }
 0x482   : > { %1600 = vmatpush3.bf16.msra.mxu1 %v589_v45  ;;  %1614 = vmatpush3.bf16.msra.mxu0 %v589_v45 }
 0x483   : > { %1605 = vmatprep.subr.bf16.mxu1 %v1767_v2  ;;  %1615 = vmatprep.subr.bf16.mxu0 %v1767_v2 }
 0x485   : > { %1602 = vmatmul.mubr.msk.bf16.vlgmr.msra.gmra.mrb[12].mxu1 %vm232_vm1, %v1733_v46 }
 0x486   : > { %1606 = vmatpush3.bf16.msra.mxu1 %v589_v45  ;;  %1609 = vmatprep.mubr.msk.bf16.mxu1 %vm1768_vm0, %v1767_v2 }
 0x487   : > { %1607 = vmatprep.subr.bf16.mxu1 %v1767_v2 }
 0x558   : > { %v648_v48 = vpop.f32.mrb[12].mxu1 }
 0x559   : > { %v649_v49 = vadd.f32 %v648_v48, %v599_v47  ;;  %v1603_v50 = vpop.f32.mrb[13].mxu1  ;;  %v902_v48 = vpop.permute.xlu1 %901 }
 0x55a   : > { %v651_v52 = vpop.f32.mrb[14].mxu1 }
 0x55b   : > { %v657_v53 = vmul.f32 0.2, %v649_v49  ;;  %v652_v54 = vadd.f32 %v651_v52, %v604_v51  ;;  %v1604_v55 = vpop.f32.mrb[15].mxu1  ;;  %vm655_vm14 = vcmp.gt.f32.partialorder %v649_v49, 0.0 }
 0x55d   : > { %vm656_vm15 = vcmp.gt.f32.partialorder %v652_v54, 0.0  ;;  %v658_v56 = vmul.f32 0.2, %v652_v54  ;;  %v659_v57 = vsel %vm655_vm14, %v649_v49, %v657_v53 }
 0x55f   : > { %v660_v58 = vsel %vm656_vm15, %v652_v54, %v658_v56 }
 0x560   : > { %v661_v59 = vpack.c.bf16 %v660_v58, %v659_v57  ;;  %v1738_v57 = vld [vmem:[%s2113_s1 + $0x50] sm:$0xff]  }
 0x562   : > { %1608 = vmatpush3.bf16.msra.mxu1 %v661_v59  ;;  %1616 = vmatpush3.bf16.msra.mxu0 %v661_v59 }
 0x563   : > { %1623 = vmatprep.subr.bf16.mxu1 %v1767_v2  ;;  %1617 = vmatprep.subr.bf16.mxu0 %v1767_v2 }
 0x565   : > { %1610 = vmatmul.mubr.msk.bf16.vlgmr.msra.gmra.mrb[16].mxu1 %vm306_vm4, %v1734_v60  ;;  %v978_v60 = vpop.permute.xlu1 %977 }
 0x566   : > { %1624 = vmatpush3.bf16.msra.mxu1 %v589_v45  ;;  %1631 = vmatprep.mubr.msk.bf16.mxu1 %vm1768_vm0, %v1767_v2 }
 0x567   : > { %1625 = vmatprep.subr.bf16.mxu1 %v1767_v2 }
 0x56a   : > { %1626 = vmatpush3.bf16.msra.mxu1 %v661_v59 }
 0x56b   : > { %1627 = vmatprep.subr.bf16.mxu1 %v1767_v2 }
 0x638   : > { %v721_v62 = vpop.f32.mrb[16].mxu1 }
 0x639   : > { %v722_v63 = vadd.f32 %v721_v62, %v672_v61  ;;  %v1611_v0 = vpop.f32.mrb[17].mxu1 }
 0x63a   : > { %v724_v3 = vpop.f32.mrb[18].mxu1 }
 0x63b   : > { %v730_v4 = vmul.f32 0.2, %v722_v63  ;;  %v725_v8 = vadd.f32 %v724_v3, %v677_v1  ;;  %v1612_v9 = vpop.f32.mrb[19].mxu1  ;;  %vm728_vm2 = vcmp.gt.f32.partialorder %v722_v63, 0.0 }
 0x63c   : > { %v1739_v9 = vld [vmem:[%s2113_s1 + $0x58] sm:$0xff]  }
 0x63d   : > { %vm729_vm3 = vcmp.gt.f32.partialorder %v725_v8, 0.0  ;;  %v731_v10 = vmul.f32 0.2, %v725_v8  ;;  %v732_v11 = vsel %vm728_vm2, %v722_v63, %v730_v4 }
 0x63f   : > { %v733_v12 = vsel %vm729_vm3, %v725_v8, %v731_v10 }
 0x640   : > { %v734_v13 = vpack.c.bf16 %v733_v12, %v732_v11 }
 0x642   : > { %1618 = vmatpush3.bf16.msra.mxu0 %v734_v13  ;;  %1628 = vmatpush3.bf16.msra.mxu1 %v734_v13 }
 0x643   : > { %1635 = vmatprep.subr.bf16.mxu0 %v1767_v2  ;;  %1629 = vmatprep.subr.bf16.mxu1 %v1767_v2 }
 0x645   : > { %1620 = vmatmul.mubr.msk.bf16.vlgmr.msra.gmra.mrb[8].mxu0 %vm381_vm7, %v1735_v7  ;;  %v1051_v7 = vpop.permute.xlu1 %1050 }
 0x646   : > { %1636 = vmatpush3.bf16.msra.mxu0 %v589_v45  ;;  %1645 = vmatprep.mubr.msk.bf16.mxu0 %vm1768_vm0, %v1767_v2 }
 0x647   : > { %1637 = vmatprep.subr.bf16.mxu0 %v1767_v2 }
 0x64a   : > { %1638 = vmatpush3.bf16.msra.mxu0 %v661_v59 }
 0x64b   : > { %1639 = vmatprep.subr.bf16.mxu0 %v1767_v2 }
 0x64e   : > { %1640 = vmatpush3.bf16.msra.mxu0 %v734_v13 }
 0x64f   : > { %1641 = vmatprep.subr.bf16.mxu0 %v1767_v2 }
 0x718   : > { %v795_v15 = vpop.f32.mrb[8].mxu0 }
 0x719   : > { %v796_v16 = vadd.f32 %v795_v15, %v746_v14  ;;  %v1621_v17 = vpop.f32.mrb[9].mxu0 }
 0x71a   : > { %v798_v19 = vpop.f32.mrb[10].mxu0 }
 0x71b   : > { %v804_v20 = vmul.f32 0.2, %v796_v16  ;;  %v799_v21 = vadd.f32 %v798_v19, %v751_v18  ;;  %v1622_v22 = vpop.f32.mrb[11].mxu0  ;;  %vm802_vm5 = vcmp.gt.f32.partialorder %v796_v16, 0.0 }
 0x71c   : > { %v1740_v22 = vld [vmem:[%s2113_s1 + $0x60] sm:$0xff]  }
 0x71d   : > { %vm803_vm6 = vcmp.gt.f32.partialorder %v799_v21, 0.0  ;;  %v805_v23 = vmul.f32 0.2, %v799_v21  ;;  %v806_v24 = vsel %vm802_vm5, %v796_v16, %v804_v20 }
 0x71f   : > { %v807_v25 = vsel %vm803_vm6, %v799_v21, %v805_v23 }
 0x720   : > { %v808_v26 = vpack.c.bf16 %v807_v25, %v806_v24 }
 0x722   : > { %1630 = vmatpush3.bf16.msra.mxu1 %v808_v26  ;;  %1642 = vmatpush3.bf16.msra.mxu0 %v808_v26 }
 0x723   : > { %1643 = vmatprep.subr.bf16.mxu0 %v1767_v2  ;;  %1649 = vmatprep.subr.bf16.mxu1 %v1767_v2 }
 0x725   : > { %1632 = vmatmul.mubr.msk.bf16.vlgmr.msra.gmra.mrb[20].mxu1 %vm457_vm10, %v1736_v27  ;;  %v1125_v27 = vpop.permute.xlu1 %1124 }
 0x726   : > { %1651 = vmatprep.mubr.msk.bf16.mxu1 %vm1768_vm0, %v1767_v2 }
 0x7f8   : > { %v870_v29 = vpop.f32.mrb[20].mxu1 }
 0x7f9   : > { %v871_v30 = vadd.f32 %v870_v29, %v821_v28  ;;  %v1633_v31 = vpop.f32.mrb[21].mxu1 }
 0x7fa   : > { %v873_v33 = vpop.f32.mrb[22].mxu1 }
 0x7fb   : > { %v879_v34 = vmul.f32 0.2, %v871_v30  ;;  %v874_v35 = vadd.f32 %v873_v33, %v826_v32  ;;  %v1634_v36 = vpop.f32.mrb[23].mxu1  ;;  %vm877_vm8 = vcmp.gt.f32.partialorder %v871_v30, 0.0 }
 0x7fc   : > { %v1741_v36 = vld [vmem:[%s2113_s1 + $0x68] sm:$0xff]  }
 0x7fd   : > { %vm878_vm9 = vcmp.gt.f32.partialorder %v874_v35, 0.0  ;;  %v880_v37 = vmul.f32 0.2, %v874_v35  ;;  %v881_v38 = vsel %vm877_vm8, %v871_v30, %v879_v34 }
 0x7ff   : > { %v882_v39 = vsel %vm878_vm9, %v874_v35, %v880_v37 }
 0x800   : > { %v883_v40 = vpack.c.bf16 %v882_v39, %v881_v38 }
 0x802   : > { %1644 = vmatpush3.bf16.msra.mxu0 %v883_v40 }
 0x803   : > { %1663 = vmatprep.subr.bf16.mxu0 %v1767_v2 }
 0x805   : > { %1646 = vmatmul.mubr.msk.bf16.vlgmr.msra.gmra.mrb[12].mxu0 %vm534_vm13, %v1737_v41  ;;  %v1200_v41 = vpop.permute.xlu1 %1199 }
 0x806   : > { %1669 = vmatprep.mubr.msk.bf16.mxu0 %vm1768_vm0, %v1767_v2 }
 0x8d8   : > { %v946_v45 = vpop.f32.mrb[12].mxu0 }
 0x8d9   : > { %v947_v46 = vadd.f32 %v946_v45, %v897_v42  ;;  %v1647_v47 = vpop.f32.mrb[13].mxu0 }
 0x8da   : > { %v949_v49 = vpop.f32.mrb[14].mxu0 }
 0x8db   : > { %v953_v50 = vmul.f32 0.2, %v947_v46  ;;  %v950_v51 = vadd.f32 %v949_v49, %v902_v48  ;;  %v1648_v52 = vpop.f32.mrb[15].mxu0 }
 0x8dd   : > { %v954_v53 = vmul.f32 0.2, %v950_v51  ;;  %v2044_v54 = vadd.f32 %v953_v50, %v1991_v43  ;;  %v973_v43 = vpop.permute.xlu0 %972 }
 0x8df   : > { %v2047_v55 = vadd.f32 %v954_v53, %v1994_v44 }
 0x8e1   : > { %v963_v56 = vpack.c.bf16 %v2047_v55, %v2044_v54  ;;  %v1046_v10 = vpop.permute.xlu0 %1045 }
 0x8e3   : > { %1650 = vmatpush3.bf16.msra.mxu1 %v963_v56  ;;  %1664 = vmatpush3.bf16.msra.mxu0 %v963_v56 }
 0x8e4   : > { %1655 = vmatprep.subr.bf16.mxu1 %v1767_v2  ;;  %1665 = vmatprep.subr.bf16.mxu0 %v1767_v2 }
 0x8e5   : > { %v1120_v23 = vpop.permute.xlu0 %1119 }
 0x8e6   : > { %1652 = vmatmul.mubr.msk.bf16.vlgmr.msra.gmra.mrb[24].mxu1 %vm232_vm1, %v1738_v57 }
 0x8e7   : > { %1656 = vmatpush3.bf16.msra.mxu1 %v963_v56  ;;  %1659 = vmatprep.mubr.msk.bf16.mxu1 %vm1768_vm0, %v1767_v2 }
 0x8e8   : > { %1657 = vmatprep.subr.bf16.mxu1 %v1767_v2 }
 0x8e9   : > { %v1195_v37 = vpop.permute.xlu0 %1194 }
 0x8ed   : > { %v1271_v52 = vpop.permute.xlu0 %1270 }
 0x9b9   : > { %v1022_v44 = vpop.f32.mrb[24].mxu1 }
 0x9ba   : > { %v1023_v58 = vadd.f32 %v1022_v44, %v973_v43  ;;  %v1653_v59 = vpop.f32.mrb[25].mxu1  ;;  %v1276_v43 = vpop.permute.xlu1 %1275 }
 0x9bb   : > { %v1025_v61 = vpop.f32.mrb[26].mxu1 }
 0x9bc   : > { %v1031_v62 = vmul.f32 0.2, %v1023_v58  ;;  %v1026_v63 = vadd.f32 %v1025_v61, %v978_v60  ;;  %v1654_v0 = vpop.f32.mrb[27].mxu1  ;;  %vm1029_vm11 = vcmp.gt.f32.partialorder %v1023_v58, 0.0 }
 0x9be   : > { %vm1030_vm12 = vcmp.gt.f32.partialorder %v1026_v63, 0.0  ;;  %v1032_v1 = vmul.f32 0.2, %v1026_v63  ;;  %v1033_v3 = vsel %vm1029_vm11, %v1023_v58, %v1031_v62 }
 0x9c0   : > { %v1034_v4 = vsel %vm1030_vm12, %v1026_v63, %v1032_v1 }
 0x9c1   : > { %v1035_v8 = vpack.c.bf16 %v1034_v4, %v1033_v3 }
 0x9c3   : > { %1658 = vmatpush3.bf16.msra.mxu1 %v1035_v8  ;;  %1666 = vmatpush3.bf16.msra.mxu0 %v1035_v8 }
 0x9c4   : > { %1673 = vmatprep.subr.bf16.mxu1 %v1767_v2  ;;  %1667 = vmatprep.subr.bf16.mxu0 %v1767_v2 }
 0x9c6   : > { %1660 = vmatmul.mubr.msk.bf16.vlgmr.msra.gmra.mrb[28].mxu1 %vm306_vm4, %v1739_v9 }
 0x9c7   : > { %1674 = vmatpush3.bf16.msra.mxu1 %v963_v56  ;;  %1681 = vmatprep.mubr.msk.bf16.mxu1 %vm1768_vm0, %v1767_v2 }
 0x9c8   : > { %1675 = vmatprep.subr.bf16.mxu1 %v1767_v2 }
 0x9cb   : > { %1676 = vmatpush3.bf16.msra.mxu1 %v1035_v8 }
 0x9cc   : > { %1677 = vmatprep.subr.bf16.mxu1 %v1767_v2 }
 0xa99   : > { %v1095_v11 = vpop.f32.mrb[28].mxu1 }
 0xa9a   : > { %v1096_v12 = vadd.f32 %v1095_v11, %v1046_v10  ;;  %v1661_v13 = vpop.f32.mrb[29].mxu1 }
 0xa9b   : > { %v1098_v14 = vpop.f32.mrb[30].mxu1 }
 0xa9c   : > { %v1104_v15 = vmul.f32 0.2, %v1096_v12  ;;  %v1099_v16 = vadd.f32 %v1098_v14, %v1051_v7  ;;  %v1662_v17 = vpop.f32.mrb[31].mxu1  ;;  %vm1102_vm1 = vcmp.gt.f32.partialorder %v1096_v12, 0.0 }
 0xa9e   : > { %vm1103_vm4 = vcmp.gt.f32.partialorder %v1099_v16, 0.0  ;;  %v1105_v18 = vmul.f32 0.2, %v1099_v16  ;;  %v1106_v19 = vsel %vm1102_vm1, %v1096_v12, %v1104_v15 }
 0xaa0   : > { %v1107_v20 = vsel %vm1103_vm4, %v1099_v16, %v1105_v18 }
 0xaa1   : > { %v1108_v21 = vpack.c.bf16 %v1107_v20, %v1106_v19 }
 0xaa3   : > { %1668 = vmatpush3.bf16.msra.mxu0 %v1108_v21  ;;  %1678 = vmatpush3.bf16.msra.mxu1 %v1108_v21 }
 0xaa4   : > { %1685 = vmatprep.subr.bf16.mxu0 %v1767_v2  ;;  %1679 = vmatprep.subr.bf16.mxu1 %v1767_v2 }
 0xaa6   : > { %1670 = vmatmul.mubr.msk.bf16.vlgmr.msra.gmra.mrb[16].mxu0 %vm381_vm7, %v1740_v22 }
 0xaa7   : > { %1686 = vmatpush3.bf16.msra.mxu0 %v963_v56  ;;  %1695 = vmatprep.mubr.msk.bf16.mxu0 %vm1768_vm0, %v1767_v2 }
 0xaa8   : > { %1687 = vmatprep.subr.bf16.mxu0 %v1767_v2 }
 0xaab   : > { %1688 = vmatpush3.bf16.msra.mxu0 %v1035_v8 }
 0xaac   : > { %1689 = vmatprep.subr.bf16.mxu0 %v1767_v2 }
 0xaaf   : > { %1690 = vmatpush3.bf16.msra.mxu0 %v1108_v21 }
 0xab0   : > { %1691 = vmatprep.subr.bf16.mxu0 %v1767_v2 }
 0xb79   : > { %v1169_v24 = vpop.f32.mrb[16].mxu0 }
 0xb7a   : > { %v1170_v25 = vadd.f32 %v1169_v24, %v1120_v23  ;;  %v1671_v26 = vpop.f32.mrb[17].mxu0 }
 0xb7b   : > { %v1172_v28 = vpop.f32.mrb[18].mxu0 }
 0xb7c   : > { %v1178_v29 = vmul.f32 0.2, %v1170_v25  ;;  %v1173_v30 = vadd.f32 %v1172_v28, %v1125_v27  ;;  %v1672_v31 = vpop.f32.mrb[19].mxu0  ;;  %vm1176_vm7 = vcmp.gt.f32.partialorder %v1170_v25, 0.0 }
 0xb7e   : > { %vm1177_vm14 = vcmp.gt.f32.partialorder %v1173_v30, 0.0  ;;  %v1179_v32 = vmul.f32 0.2, %v1173_v30  ;;  %v1180_v33 = vsel %vm1176_vm7, %v1170_v25, %v1178_v29 }
 0xb80   : > { %v1181_v34 = vsel %vm1177_vm14, %v1173_v30, %v1179_v32 }
 0xb81   : > { %v1182_v35 = vpack.c.bf16 %v1181_v34, %v1180_v33 }
 0xb83   : > { %1680 = vmatpush3.bf16.msra.mxu1 %v1182_v35  ;;  %1692 = vmatpush3.bf16.msra.mxu0 %v1182_v35 }
 0xb84   : > { %1693 = vmatprep.subr.bf16.mxu0 %v1767_v2  ;;  %v1742_v2 = vld [vmem:[%s2113_s1 + $0x70] sm:$0xff]  }
 0xb86   : > { %1682 = vmatmul.mubr.msk.bf16.vlgmr.msra.gmra.mrb[32].mxu1 %vm457_vm10, %v1741_v36 }
 0xc59   : > { %v1244_v38 = vpop.f32.mrb[32].mxu1 }
 0xc5a   : > { %v1245_v39 = vadd.f32 %v1244_v38, %v1195_v37  ;;  %v1683_v40 = vpop.f32.mrb[33].mxu1 }
 0xc5b   : > { %v1247_v42 = vpop.f32.mrb[34].mxu1 }
 0xc5c   : > { %v1253_v45 = vmul.f32 0.2, %v1245_v39  ;;  %v1248_v46 = vadd.f32 %v1247_v42, %v1200_v41  ;;  %v1684_v47 = vpop.f32.mrb[35].mxu1  ;;  %vm1251_vm0 = vcmp.gt.f32.partialorder %v1245_v39, 0.0 }
 0xc5e   : > { %vm1252_vm15 = vcmp.gt.f32.partialorder %v1248_v46, 0.0  ;;  %v1254_v48 = vmul.f32 0.2, %v1248_v46  ;;  %v1255_v49 = vsel %vm1251_vm0, %v1245_v39, %v1253_v45 }
 0xc60   : > { %v1256_v50 = vsel %vm1252_vm15, %v1248_v46, %v1254_v48 }
 0xc61   : > { %v1257_v51 = vpack.c.bf16 %v1256_v50, %v1255_v49 }
 0xc63   : > { %1694 = vmatpush3.bf16.msra.mxu0 %v1257_v51 }
 0xc66   : > { %1696 = vmatmul.mubr.msk.bf16.vlgmr.msra.gmra.mrb[20].mxu0 %vm534_vm13, %v1742_v2 }
 0xd39   : > { %v1320_v53 = vpop.f32.mrb[20].mxu0 }
 0xd3a   : > { %v1321_v56 = vadd.f32 %v1320_v53, %v1271_v52  ;;  %v1697_v57 = vpop.f32.mrb[21].mxu0 }
 0xd3b   : > { %v1323_v44 = vpop.f32.mrb[22].mxu0 }
 0xd3c   : > { %v1327_v58 = vmul.f32 0.2, %v1321_v56  ;;  %v1324_v59 = vadd.f32 %v1323_v44, %v1276_v43  ;;  %v1698_v60 = vpop.f32.mrb[23].mxu0 }
 0xd3e   : > { %v1331_v61 = vadd.f32 %v1327_v58, %v2044_v54  ;;  %v1328_v62 = vmul.f32 0.2, %v1324_v59 }
 0xd40   : > { %v1337_v63 = vmul.f32 0.2, %v1331_v61  ;;  %v1332_v0 = vadd.f32 %v1328_v62, %v2047_v55  ;;  %1351 = sbr.rel (!%p1820_p5) target bundleno = 3407 (0xd4f), region = 74 }
 0xd42   : > { %v1341_v1 = vadd.f32 %v1337_v63, %v1843_v5  ;;  %v1338_v3 = vmul.f32 0.2, %v1332_v0 }
 0xd44   : > { %1343 = vst [vmem:[%s202_s18] sm:$0xff] %v1341_v1  ;;  %v1342_v4 = vadd.f32 %v1338_v3, %v1845_v6 }
 0xd46   : > { %1344 = vst [vmem:[%s202_s18 + $0x8] sm:$0xff] %v1342_v4 }
 0xd4b   : > { %v1383_v8 = vld [vmem:[%s202_s18] sm:$0xff] }
 0xd4c   : > { %1384 = vst [vmem:[%s1353_s24] sm:$0xff] %v1383_v8 }
 0xd4d   : > { %v1385_v54 = vld [vmem:[%s202_s18 + $0x8] sm:$0xff] }
 0xd4e   : > { %1386 = vst [vmem:[%s1353_s24 + $0x20] sm:$0xff] %v1385_v54 }
 0xd4f PF: > { %p10_p10 = scmp.ge.s32.totalorder %s1807_s16, 6   ;;  %s2117_s12 = smov %s1761_s13 }
 0xd50   : > { %s2118_s13 = smov %s1818_s19  ;;  %s2119_s14 = smov %s1807_s16 }
 0xd51   :  { %12 = sbr.rel (!%p10_p10) target bundleno = 2 (0x2), region = 143 }

</bundles_post_ra>
